<compile_context>
chip_gen: v6e
topology: v6e:2x2x1
jax: 0.10.0
libtpu: 0.0.40
codegen_flags: <defaults>
</compile_context>

<pallas_src>
import functools

import jax
import jax.numpy as jnp
from jax.experimental import pallas as pl
from jax.experimental.pallas import tpu as pltpu

LN_EPS = 1e-5  # PyTorch nn.LayerNorm default


def _round_up(n, m):
    return ((n + m - 1) // m) * m


def _layernorm_tanh(h, gamma, beta):
    """LayerNorm (biased variance, PyTorch-style) + Tanh, all in f32.

    var = E[h^2] - mu^2: two independent XLU reductions, no (h - mu) pre-pass.
    """
    mu = jnp.mean(h, axis=-1, keepdims=True)
    ms = jnp.mean(h * h, axis=-1, keepdims=True)
    var = ms - mu * mu
    hn = (h - mu) * jax.lax.rsqrt(var + LN_EPS)
    return jnp.tanh(hn * gamma + beta)


def mlp_kernel(x_ref, w1_ref, w2_ref, w3_ref, vec_ref, o_ref, *, num_chunks):
    """Fused MLP forward: (Linear+LN+Tanh) x2 then Linear, per batch tile.

    x_ref  : (T, F_pad)    bf16 activations tile (bias column = 1.0 at f_in)
    w1_ref : (F_pad, H1)   bf16 (row f_in holds the fc0 bias)
    w2_ref : (H1, H2)      bf16
    w3_ref : (H2, OUT_PAD) bf16
    vec_ref: (8, max(H2,OUT_PAD)) f32 packed rows:
             [g1, be1, b2, g2, be2, b3_pad, 0, 0]
    o_ref  : (T, OUT_PAD)  bf16 lane-dense output slab

    The tile is processed as `num_chunks` independent row-chunks so the LLO
    scheduler can interleave MXU / XLU / EUP work across chunks.
    """
    h1 = w1_ref.shape[1]
    h2 = w2_ref.shape[1]
    out_pad = w3_ref.shape[1]
    bt = x_ref.shape[0]
    rows = bt // num_chunks

    vec = vec_ref[...]  # single (8, vw) f32 load for all per-feature vectors
    g1, be1 = vec[0:1, :h1], vec[1:2, :h1]
    b2, g2, be2 = vec[2:3, :h2], vec[3:4, :h2], vec[4:5, :h2]
    b3 = vec[5:6, :out_pad]

    w1 = w1_ref[...]
    w2 = w2_ref[...]
    w3 = w3_ref[...]

    for c in range(num_chunks):  # unrolled: independent chains, free to interleave
        r0 = c * rows
        x = x_ref[pl.ds(r0, rows), :]                       # bf16 operand

        # fc0: Linear(F_pad, H1) (bias folded into w1) + LayerNorm + Tanh
        h = jnp.dot(x, w1, preferred_element_type=jnp.float32)
        h = _layernorm_tanh(h, g1, be1)

        # fc1: Linear(H1, H2) + LayerNorm + Tanh
        h = jnp.dot(h.astype(jnp.bfloat16), w2,
                    preferred_element_type=jnp.float32) + b2
        h = _layernorm_tanh(h, g2, be2)

        # fc100: Linear(H2, OUT_PAD)  (lane-dense padded projection)
        logits = jnp.dot(h.astype(jnp.bfloat16), w3,
                         preferred_element_type=jnp.float32) + b3
        o_ref[pl.ds(r0, rows), :] = logits.astype(o_ref.dtype)


def _select_tile(B, batch_tile):
    """Pick a legal, performant batch tile (always a multiple of 8)."""
    if B < 256:
        return _round_up(max(B, 8), 8)            # small batch: single tile
    bt = max(256, (min(batch_tile, _round_up(B, 256)) // 256) * 256)
    if B >= 1024:
        # >= ~4 grid steps (>= 2 per TensorCore on v7x dual-core) for overlap.
        bt = min(bt, max(256, (B // 4) // 256 * 256))
    return bt


def neural_network_forward(x, params, *, batch_tile=512):
    """x: (B, 6) float32.  params: dict of f32 weights (see init_params)."""
    B, f_in = x.shape
    h1 = params["w1"].shape[1]
    h2 = params["w2"].shape[1]
    num_labels = params["w3"].shape[1]

    f_pad = _round_up(f_in + 1, 8)                 # sublane-aligned K, +1 bias col
    out_pad = _round_up(max(num_labels, 128), 128)  # lane-dense output slab
    vw = max(h1, h2, out_pad)                      # packed-vector width

    bt = _select_tile(B, batch_tile)
    b_pad = _round_up(B, bt)
    grid = (b_pad // bt,)
    num_chunks = 2 if (bt % 16 == 0 and bt >= 16) else 1

    # ---- kernel-ready parameters (padded, bf16 matmul operands) ----
    w1 = jnp.zeros((f_pad, h1), jnp.float32)
    w1 = w1.at[:f_in, :].set(jnp.asarray(params["w1"], jnp.float32))
    w1 = w1.at[f_in, :].set(jnp.asarray(params["b1"], jnp.float32).reshape(-1))
    w1 = w1.astype(jnp.bfloat16)                   # fc0 bias folded into row f_in
    w2 = jnp.asarray(params["w2"], jnp.float32).astype(jnp.bfloat16)
    w3 = jnp.pad(jnp.asarray(params["w3"], jnp.float32),
                 ((0, 0), (0, out_pad - num_labels))).astype(jnp.bfloat16)

    def row(v, width):
        v = jnp.asarray(v, jnp.float32).reshape(1, -1)
        return jnp.pad(v, ((0, 0), (0, width - v.shape[1])))

    b3_pad = jnp.pad(jnp.asarray(params["b3"], jnp.float32).reshape(1, -1),
                     ((0, 0), (0, out_pad - num_labels)))
    vec = jnp.concatenate([
        row(params["g1"], vw), row(params["be1"], vw),
        row(params["b2"], vw), row(params["g2"], vw), row(params["be2"], vw),
        row(b3_pad, vw),
        jnp.zeros((2, vw), jnp.float32),
    ], axis=0)                                     # (8, vw): one param slab

    # padded bf16 input, bias column set to 1.0 (multiplies the folded b1 row)
    xp = jnp.zeros((b_pad, f_pad), jnp.bfloat16)
    xp = xp.at[:, f_in].set(jnp.asarray(1.0, jnp.bfloat16))
    xp = xp.at[:B, :f_in].set(x.astype(jnp.bfloat16))

    cost = pl.CostEstimate(
        flops=2 * b_pad * (f_pad * h1 + h1 * h2 + h2 * out_pad),
        transcendentals=b_pad * (h1 + h2 + 2),
        bytes_accessed=(xp.size * 2 + b_pad * out_pad * 2
                        + w1.size * 2 + w2.size * 2 + w3.size * 2
                        + vec.size * 4),
    )

    out = pl.pallas_call(
        functools.partial(mlp_kernel, num_chunks=num_chunks),
        out_shape=jax.ShapeDtypeStruct((b_pad, out_pad), jnp.bfloat16),
        grid_spec=pl.GridSpec(
            grid=grid,
            in_specs=[
                pl.BlockSpec((bt, f_pad), lambda i: (i, 0)),   # x batch tile
                pl.BlockSpec(w1.shape, lambda i: (0, 0)),      # params: constant
                pl.BlockSpec(w2.shape, lambda i: (0, 0)),      #   index_map, no
                pl.BlockSpec(w3.shape, lambda i: (0, 0)),      #   re-streaming
                pl.BlockSpec(vec.shape, lambda i: (0, 0)),
            ],
            out_specs=pl.BlockSpec((bt, out_pad), lambda i: (i, 0)),
        ),
        compiler_params=pltpu.CompilerParams(
            dimension_semantics=("parallel",),
            vmem_limit_bytes=32 << 20),
        cost_estimate=cost,
    )(xp, w1, w2, w3, vec)

    return out[:B, :num_labels].astype(jnp.float32)


def init_params(key, fc_nums=(6, 128, 256), num_labels=3):
    """Deterministic synthetic init mirroring the module's parameter shapes."""
    ks = jax.random.split(key, 6)
    d0, d1, d2 = fc_nums
    scale = lambda fan_in: 1.0 / jnp.sqrt(jnp.float32(fan_in))
    params = {
        # fc0
        "w1": jax.random.uniform(ks[0], (d0, d1), jnp.float32, -1, 1) * scale(d0),
        "b1": jax.random.uniform(ks[1], (1, d1), jnp.float32, -1, 1) * scale(d0),
        "g1": jnp.ones((1, d1), jnp.float32),    # LayerNorm weight
        "be1": jnp.zeros((1, d1), jnp.float32),  # LayerNorm bias
        # fc1
        "w2": jax.random.uniform(ks[2], (d1, d2), jnp.float32, -1, 1) * scale(d1),
        "b2": jax.random.uniform(ks[3], (1, d2), jnp.float32, -1, 1) * scale(d1),
        "g2": jnp.ones((1, d2), jnp.float32),
        "be2": jnp.zeros((1, d2), jnp.float32),
        # fc100
        "w3": jax.random.uniform(ks[4], (d2, num_labels), jnp.float32, -1, 1) * scale(d2),
        "b3": jax.random.uniform(ks[5], (1, num_labels), jnp.float32, -1, 1) * scale(d2),
    }
    return params


def reference_forward(x, p):
    """Pure-JAX f32 reference (mirrors PyTorch forward) for correctness check."""
    h = x @ p["w1"] + p["b1"]
    mu = h.mean(-1, keepdims=True); var = ((h - mu) ** 2).mean(-1, keepdims=True)
    h = jnp.tanh((h - mu) / jnp.sqrt(var + LN_EPS) * p["g1"] + p["be1"])
    h = h @ p["w2"] + p["b2"]
    mu = h.mean(-1, keepdims=True); var = ((h - mu) ** 2).mean(-1, keepdims=True)
    h = jnp.tanh((h - mu) / jnp.sqrt(var + LN_EPS) * p["g2"] + p["be2"])
    return h @ p["w3"] + p["b3"]


if __name__ == "__main__":
    key = jax.random.PRNGKey(0)
    k_x, k_p = jax.random.split(key)

    B, F_IN, NUM_LABELS = 64, 6, 3
    x = jax.random.normal(k_x, (B, F_IN), jnp.float32)
    params = init_params(k_p, fc_nums=(F_IN, 128, 256), num_labels=NUM_LABELS)

    fwd = jax.jit(functools.partial(neural_network_forward, batch_tile=512))
    logits = fwd(x, params)
    jax.block_until_ready(logits)

    ref = reference_forward(x, params)
    assert logits.shape == (B, NUM_LABELS)
    # bf16 matmul operands + bf16 output slab => looser tolerance vs f32 ref.
    assert jnp.allclose(logits, ref, atol=3e-2, rtol=3e-2), "mismatch vs reference"

    print("KERNEL_OK")
</pallas_src>

<mosaic_0001>
module attributes {stable_mosaic.version = 11 : i64} {
  func.func @mlp_kernel(%arg0: i32, %arg1: memref<64x8xbf16, #tpu.memory_space<vmem>>, %arg2: memref<8x128xbf16, #tpu.memory_space<vmem>>, %arg3: memref<128x256xbf16, #tpu.memory_space<vmem>>, %arg4: memref<256x128xbf16, #tpu.memory_space<vmem>>, %arg5: memref<8x256xf32, #tpu.memory_space<vmem>>, %arg6: memref<64x128xbf16, #tpu.memory_space<vmem>>) attributes {dimension_semantics = [#tpu.dimension_semantics<parallel>], iteration_bounds = array<i64: 1>, scalar_prefetch = 0 : i64, scratch_operands = 0 : i64, tpu.core_type = #tpu.core_type<tc>, window_params = [{transform_indices = @transform_0, window_bounds = array<i64: 64, 8>}, {pipeline_mode = #tpu.pipeline_mode<synchronous>, transform_indices = @transform_1, window_bounds = array<i64: 8, 128>}, {pipeline_mode = #tpu.pipeline_mode<synchronous>, transform_indices = @transform_2, window_bounds = array<i64: 128, 256>}, {pipeline_mode = #tpu.pipeline_mode<synchronous>, transform_indices = @transform_3, window_bounds = array<i64: 256, 128>}, {pipeline_mode = #tpu.pipeline_mode<synchronous>, transform_indices = @transform_4, window_bounds = array<i64: 8, 256>}, {transform_indices = @transform_5, window_bounds = array<i64: 64, 128>}]} {
    %c0 = arith.constant 0 : index
    %c0_0 = arith.constant 0 : index
    %0 = vector.load %arg5[%c0, %c0_0] : memref<8x256xf32, #tpu.memory_space<vmem>>, vector<8x256xf32>
    %1 = vector.extract_strided_slice %0 {offsets = [0, 0], sizes = [1, 128], strides = [1, 1]} : vector<8x256xf32> to vector<1x128xf32>
    %2 = vector.extract_strided_slice %0 {offsets = [1, 0], sizes = [1, 128], strides = [1, 1]} : vector<8x256xf32> to vector<1x128xf32>
    %3 = vector.extract_strided_slice %0 {offsets = [2, 0], sizes = [1, 256], strides = [1, 1]} : vector<8x256xf32> to vector<1x256xf32>
    %4 = vector.extract_strided_slice %0 {offsets = [3, 0], sizes = [1, 256], strides = [1, 1]} : vector<8x256xf32> to vector<1x256xf32>
    %5 = vector.extract_strided_slice %0 {offsets = [4, 0], sizes = [1, 256], strides = [1, 1]} : vector<8x256xf32> to vector<1x256xf32>
    %6 = vector.extract_strided_slice %0 {offsets = [5, 0], sizes = [1, 128], strides = [1, 1]} : vector<8x256xf32> to vector<1x128xf32>
    %c0_1 = arith.constant 0 : index
    %c0_2 = arith.constant 0 : index
    %7 = vector.load %arg2[%c0_1, %c0_2] : memref<8x128xbf16, #tpu.memory_space<vmem>>, vector<8x128xbf16>
    %c0_3 = arith.constant 0 : index
    %c0_4 = arith.constant 0 : index
    %8 = vector.load %arg3[%c0_3, %c0_4] : memref<128x256xbf16, #tpu.memory_space<vmem>>, vector<128x256xbf16>
    %c0_5 = arith.constant 0 : index
    %c0_6 = arith.constant 0 : index
    %9 = vector.load %arg4[%c0_5, %c0_6] : memref<256x128xbf16, #tpu.memory_space<vmem>>, vector<256x128xbf16>
    %c0_7 = arith.constant 0 : index
    %c0_8 = arith.constant 0 : index
    %10 = vector.load %arg1[%c0_7, %c0_8] : memref<64x8xbf16, #tpu.memory_space<vmem>>, vector<32x8xbf16>
    %cst = arith.constant dense<0.000000e+00> : vector<32x128xf32>
    %11 = tpu.matmul %10, %7, %cst {dimension_numbers = #tpu.dot_dimension_numbers<[1], [0], [0], [1], [0, 0, 1, 1], [], []>} : vector<32x8xbf16>, vector<8x128xbf16>, vector<32x128xf32> -> vector<32x128xf32>
    %cst_9 = arith.constant dense<0.000000e+00> : vector<32xf32>
    %12 = vector.multi_reduction <add>, %11, %cst_9 [1] : vector<32x128xf32> to vector<32xf32>
    %13 = vector.shape_cast %12 : vector<32xf32> to vector<32x1xf32>
    %cst_10 = arith.constant 1.280000e+02 : f32
    %14 = vector.broadcast %cst_10 : f32 to vector<32x1xf32>
    %15 = arith.divf %13, %14 : vector<32x1xf32>
    %16 = arith.mulf %11, %11 : vector<32x128xf32>
    %cst_11 = arith.constant dense<0.000000e+00> : vector<32xf32>
    %17 = vector.multi_reduction <add>, %16, %cst_11 [1] : vector<32x128xf32> to vector<32xf32>
    %18 = vector.shape_cast %17 : vector<32xf32> to vector<32x1xf32>
    %cst_12 = arith.constant 1.280000e+02 : f32
    %19 = vector.broadcast %cst_12 : f32 to vector<32x1xf32>
    %20 = arith.divf %18, %19 : vector<32x1xf32>
    %21 = arith.mulf %15, %15 : vector<32x1xf32>
    %22 = arith.subf %20, %21 : vector<32x1xf32>
    %23 = vector.broadcast %15 : vector<32x1xf32> to vector<32x128xf32>
    %24 = arith.subf %11, %23 : vector<32x128xf32>
    %cst_13 = arith.constant 9.99999974E-6 : f32
    %25 = vector.broadcast %cst_13 : f32 to vector<32x1xf32>
    %26 = arith.addf %22, %25 : vector<32x1xf32>
    %27 = math.rsqrt %26 : vector<32x1xf32>
    %28 = vector.broadcast %27 : vector<32x1xf32> to vector<32x128xf32>
    %29 = arith.mulf %24, %28 : vector<32x128xf32>
    %30 = vector.broadcast %1 : vector<1x128xf32> to vector<32x128xf32>
    %31 = arith.mulf %29, %30 : vector<32x128xf32>
    %32 = vector.broadcast %2 : vector<1x128xf32> to vector<32x128xf32>
    %33 = arith.addf %31, %32 : vector<32x128xf32>
    %34 = math.tanh %33 : vector<32x128xf32>
    %35 = arith.truncf %34 : vector<32x128xf32> to vector<32x128xbf16>
    %cst_14 = arith.constant dense<0.000000e+00> : vector<32x256xf32>
    %36 = tpu.matmul %35, %8, %cst_14 {dimension_numbers = #tpu.dot_dimension_numbers<[1], [0], [0], [1], [0, 0, 1, 1], [], []>} : vector<32x128xbf16>, vector<128x256xbf16>, vector<32x256xf32> -> vector<32x256xf32>
    %37 = vector.broadcast %3 : vector<1x256xf32> to vector<32x256xf32>
    %38 = arith.addf %36, %37 : vector<32x256xf32>
    %cst_15 = arith.constant dense<0.000000e+00> : vector<32xf32>
    %39 = vector.multi_reduction <add>, %38, %cst_15 [1] : vector<32x256xf32> to vector<32xf32>
    %40 = vector.shape_cast %39 : vector<32xf32> to vector<32x1xf32>
    %cst_16 = arith.constant 2.560000e+02 : f32
    %41 = vector.broadcast %cst_16 : f32 to vector<32x1xf32>
    %42 = arith.divf %40, %41 : vector<32x1xf32>
    %43 = arith.mulf %38, %38 : vector<32x256xf32>
    %cst_17 = arith.constant dense<0.000000e+00> : vector<32xf32>
    %44 = vector.multi_reduction <add>, %43, %cst_17 [1] : vector<32x256xf32> to vector<32xf32>
    %45 = vector.shape_cast %44 : vector<32xf32> to vector<32x1xf32>
    %cst_18 = arith.constant 2.560000e+02 : f32
    %46 = vector.broadcast %cst_18 : f32 to vector<32x1xf32>
    %47 = arith.divf %45, %46 : vector<32x1xf32>
    %48 = arith.mulf %42, %42 : vector<32x1xf32>
    %49 = arith.subf %47, %48 : vector<32x1xf32>
    %50 = vector.broadcast %42 : vector<32x1xf32> to vector<32x256xf32>
    %51 = arith.subf %38, %50 : vector<32x256xf32>
    %cst_19 = arith.constant 9.99999974E-6 : f32
    %52 = vector.broadcast %cst_19 : f32 to vector<32x1xf32>
    %53 = arith.addf %49, %52 : vector<32x1xf32>
    %54 = math.rsqrt %53 : vector<32x1xf32>
    %55 = vector.broadcast %54 : vector<32x1xf32> to vector<32x256xf32>
    %56 = arith.mulf %51, %55 : vector<32x256xf32>
    %57 = vector.broadcast %4 : vector<1x256xf32> to vector<32x256xf32>
    %58 = arith.mulf %56, %57 : vector<32x256xf32>
    %59 = vector.broadcast %5 : vector<1x256xf32> to vector<32x256xf32>
    %60 = arith.addf %58, %59 : vector<32x256xf32>
    %61 = math.tanh %60 : vector<32x256xf32>
    %62 = arith.truncf %61 : vector<32x256xf32> to vector<32x256xbf16>
    %cst_20 = arith.constant dense<0.000000e+00> : vector<32x128xf32>
    %63 = tpu.matmul %62, %9, %cst_20 {dimension_numbers = #tpu.dot_dimension_numbers<[1], [0], [0], [1], [0, 0, 1, 1], [], []>} : vector<32x256xbf16>, vector<256x128xbf16>, vector<32x128xf32> -> vector<32x128xf32>
    %64 = vector.broadcast %6 : vector<1x128xf32> to vector<32x128xf32>
    %65 = arith.addf %63, %64 : vector<32x128xf32>
    %66 = arith.truncf %65 : vector<32x128xf32> to vector<32x128xbf16>
    %c0_21 = arith.constant 0 : index
    %c0_22 = arith.constant 0 : index
    %67 = vector.load %arg6[%c0_21, %c0_22] : memref<64x128xbf16, #tpu.memory_space<vmem>>, vector<32x128xbf16>
    tpu.vector_store %arg6[%c0_21, %c0_22], %66 {strides = array<i32>} : memref<64x128xbf16, #tpu.memory_space<vmem>>, vector<32x128xbf16>,
    %c32 = arith.constant 32 : index
    %c0_23 = arith.constant 0 : index
    %68 = vector.load %arg1[%c32, %c0_23] : memref<64x8xbf16, #tpu.memory_space<vmem>>, vector<32x8xbf16>
    %cst_24 = arith.constant dense<0.000000e+00> : vector<32x128xf32>
    %69 = tpu.matmul %68, %7, %cst_24 {dimension_numbers = #tpu.dot_dimension_numbers<[1], [0], [0], [1], [0, 0, 1, 1], [], []>} : vector<32x8xbf16>, vector<8x128xbf16>, vector<32x128xf32> -> vector<32x128xf32>
    %cst_25 = arith.constant dense<0.000000e+00> : vector<32xf32>
    %70 = vector.multi_reduction <add>, %69, %cst_25 [1] : vector<32x128xf32> to vector<32xf32>
    %71 = vector.shape_cast %70 : vector<32xf32> to vector<32x1xf32>
    %cst_26 = arith.constant 1.280000e+02 : f32
    %72 = vector.broadcast %cst_26 : f32 to vector<32x1xf32>
    %73 = arith.divf %71, %72 : vector<32x1xf32>
    %74 = arith.mulf %69, %69 : vector<32x128xf32>
    %cst_27 = arith.constant dense<0.000000e+00> : vector<32xf32>
    %75 = vector.multi_reduction <add>, %74, %cst_27 [1] : vector<32x128xf32> to vector<32xf32>
    %76 = vector.shape_cast %75 : vector<32xf32> to vector<32x1xf32>
    %cst_28 = arith.constant 1.280000e+02 : f32
    %77 = vector.broadcast %cst_28 : f32 to vector<32x1xf32>
    %78 = arith.divf %76, %77 : vector<32x1xf32>
    %79 = arith.mulf %73, %73 : vector<32x1xf32>
    %80 = arith.subf %78, %79 : vector<32x1xf32>
    %81 = vector.broadcast %73 : vector<32x1xf32> to vector<32x128xf32>
    %82 = arith.subf %69, %81 : vector<32x128xf32>
    %cst_29 = arith.constant 9.99999974E-6 : f32
    %83 = vector.broadcast %cst_29 : f32 to vector<32x1xf32>
    %84 = arith.addf %80, %83 : vector<32x1xf32>
    %85 = math.rsqrt %84 : vector<32x1xf32>
    %86 = vector.broadcast %85 : vector<32x1xf32> to vector<32x128xf32>
    %87 = arith.mulf %82, %86 : vector<32x128xf32>
    %88 = vector.broadcast %1 : vector<1x128xf32> to vector<32x128xf32>
    %89 = arith.mulf %87, %88 : vector<32x128xf32>
    %90 = vector.broadcast %2 : vector<1x128xf32> to vector<32x128xf32>
    %91 = arith.addf %89, %90 : vector<32x128xf32>
    %92 = math.tanh %91 : vector<32x128xf32>
    %93 = arith.truncf %92 : vector<32x128xf32> to vector<32x128xbf16>
    %cst_30 = arith.constant dense<0.000000e+00> : vector<32x256xf32>
    %94 = tpu.matmul %93, %8, %cst_30 {dimension_numbers = #tpu.dot_dimension_numbers<[1], [0], [0], [1], [0, 0, 1, 1], [], []>} : vector<32x128xbf16>, vector<128x256xbf16>, vector<32x256xf32> -> vector<32x256xf32>
    %95 = vector.broadcast %3 : vector<1x256xf32> to vector<32x256xf32>
    %96 = arith.addf %94, %95 : vector<32x256xf32>
    %cst_31 = arith.constant dense<0.000000e+00> : vector<32xf32>
    %97 = vector.multi_reduction <add>, %96, %cst_31 [1] : vector<32x256xf32> to vector<32xf32>
    %98 = vector.shape_cast %97 : vector<32xf32> to vector<32x1xf32>
    %cst_32 = arith.constant 2.560000e+02 : f32
    %99 = vector.broadcast %cst_32 : f32 to vector<32x1xf32>
    %100 = arith.divf %98, %99 : vector<32x1xf32>
    %101 = arith.mulf %96, %96 : vector<32x256xf32>
    %cst_33 = arith.constant dense<0.000000e+00> : vector<32xf32>
    %102 = vector.multi_reduction <add>, %101, %cst_33 [1] : vector<32x256xf32> to vector<32xf32>
    %103 = vector.shape_cast %102 : vector<32xf32> to vector<32x1xf32>
    %cst_34 = arith.constant 2.560000e+02 : f32
    %104 = vector.broadcast %cst_34 : f32 to vector<32x1xf32>
    %105 = arith.divf %103, %104 : vector<32x1xf32>
    %106 = arith.mulf %100, %100 : vector<32x1xf32>
    %107 = arith.subf %105, %106 : vector<32x1xf32>
    %108 = vector.broadcast %100 : vector<32x1xf32> to vector<32x256xf32>
    %109 = arith.subf %96, %108 : vector<32x256xf32>
    %cst_35 = arith.constant 9.99999974E-6 : f32
    %110 = vector.broadcast %cst_35 : f32 to vector<32x1xf32>
    %111 = arith.addf %107, %110 : vector<32x1xf32>
    %112 = math.rsqrt %111 : vector<32x1xf32>
    %113 = vector.broadcast %112 : vector<32x1xf32> to vector<32x256xf32>
    %114 = arith.mulf %109, %113 : vector<32x256xf32>
    %115 = vector.broadcast %4 : vector<1x256xf32> to vector<32x256xf32>
    %116 = arith.mulf %114, %115 : vector<32x256xf32>
    %117 = vector.broadcast %5 : vector<1x256xf32> to vector<32x256xf32>
    %118 = arith.addf %116, %117 : vector<32x256xf32>
    %119 = math.tanh %118 : vector<32x256xf32>
    %120 = arith.truncf %119 : vector<32x256xf32> to vector<32x256xbf16>
    %cst_36 = arith.constant dense<0.000000e+00> : vector<32x128xf32>
    %121 = tpu.matmul %120, %9, %cst_36 {dimension_numbers = #tpu.dot_dimension_numbers<[1], [0], [0], [1], [0, 0, 1, 1], [], []>} : vector<32x256xbf16>, vector<256x128xbf16>, vector<32x128xf32> -> vector<32x128xf32>
    %122 = vector.broadcast %6 : vector<1x128xf32> to vector<32x128xf32>
    %123 = arith.addf %121, %122 : vector<32x128xf32>
    %124 = arith.truncf %123 : vector<32x128xf32> to vector<32x128xbf16>
    %c32_37 = arith.constant 32 : index
    %c0_38 = arith.constant 0 : index
    %125 = vector.load %arg6[%c32_37, %c0_38] : memref<64x128xbf16, #tpu.memory_space<vmem>>, vector<32x128xbf16>
    tpu.vector_store %arg6[%c32_37, %c0_38], %124 {strides = array<i32>} : memref<64x128xbf16, #tpu.memory_space<vmem>>, vector<32x128xbf16>,
    return
  }
  func.func @transform_0(%arg0: i32) -> (i32, i32) {
    %c0_i32 = arith.constant 0 : i32
    %c0_i32_0 = arith.constant 0 : i32
    return %arg0, %c0_i32 : i32, i32
  }
  func.func @transform_1(%arg0: i32) -> (i32, i32) {
    %c0_i32 = arith.constant 0 : i32
    %c0_i32_0 = arith.constant 0 : i32
    %c0_i32_1 = arith.constant 0 : i32
    return %c0_i32, %c0_i32_0 : i32, i32
  }
  func.func @transform_2(%arg0: i32) -> (i32, i32) {
    %c0_i32 = arith.constant 0 : i32
    %c0_i32_0 = arith.constant 0 : i32
    %c0_i32_1 = arith.constant 0 : i32
    return %c0_i32, %c0_i32_0 : i32, i32
  }
  func.func @transform_3(%arg0: i32) -> (i32, i32) {
    %c0_i32 = arith.constant 0 : i32
    %c0_i32_0 = arith.constant 0 : i32
    %c0_i32_1 = arith.constant 0 : i32
    return %c0_i32, %c0_i32_0 : i32, i32
  }
  func.func @transform_4(%arg0: i32) -> (i32, i32) {
    %c0_i32 = arith.constant 0 : i32
    %c0_i32_0 = arith.constant 0 : i32
    %c0_i32_1 = arith.constant 0 : i32
    return %c0_i32, %c0_i32_0 : i32, i32
  }
  func.func @transform_5(%arg0: i32) -> (i32, i32) {
    %c0_i32 = arith.constant 0 : i32
    %c0_i32_0 = arith.constant 0 : i32
    return %arg0, %c0_i32 : i32, i32
  }
}

</mosaic_0001>

<bundles_post_ra>
// kernel: neural_network_forward.1
= control target key start
LH: loop header
LB: loop body
LE: loop exit
PB: predicated region body
PF: predicated region fallthrough
CT: control target
= control target key end

     0   :  { %vm93_vm0 = vcmask 1043456   ;;  %vm86_vm1 = vcmask 64512   ;;  %v1289_v27 = vmov 0   ;;  %v199_v42 = vlaneseq  ;;  %s1815_s1 = inlined_call_operand.vmem [shape: bf16[8,128], index: 1, kind: input, shape index: {}]   ;;  %s1816_s0 = inlined_call_operand.vmem [shape: bf16[64,8], index: 0, kind: input, shape index: {}]   ;;  %s1817_s2 = inlined_call_operand.vmem [shape: bf16[128,256], index: 2, kind: input, shape index: {}]   ;;  %s1818_s4 = inlined_call_operand.vmem [shape: f32[8,256], index: 4, kind: input, shape index: {}]   ;;  %s1819_s3 = inlined_call_operand.vmem [shape: bf16[256,128], index: 3, kind: input, shape index: {}]   ;;  %s1820_s5 = inlined_call_operand.vmem [shape: bf16[64,128], index: 5, kind: output, shape index: {}]  }
   0x1   :  { %v23_v0 = vld [vmem:[%s1815_s1] sm:$0xf]  ;;  %v1166_v3 = vld [vmem:[%s1816_s0 + $0x8] sm:$0xff]   ;;  %v1359_v12 = vld [vmem:[%s1817_s2 + $0x74] ss:$8 sps:$4 sm:$0xff]   ;;  %341 = vmatprep.mubr.bf16.mxu1 %v1289_v27 }
   0x2   :  { %1162 = vmatprep.subr.msk.bf16.mxu0 %vm93_vm0, %v23_v0  ;;  %v1325_v1 = vsel %vm93_vm0, %v23_v0, 0  ;;  %v1165_v2 = vld [vmem:[%s1816_s0] sm:$0xff]   ;;  %v1364_v13 = vld [vmem:[%s1817_s2 + $0x70] ss:$8 sps:$4 sm:$0xff]   ;;  %309 = vmatprep.subr.bf16.mxu1 %v1359_v12  ;;  %v1383_v16 = vld [vmem:[%s1817_s2 + $0x54] ss:$8 sps:$4 sm:$0xff]  }
   0x3   :  { %1151 = vmatpush3.bf16.msra.mxu0 %v1325_v1  ;;  %1152 = vmatprep.mubr.msk.bf16.mxu0 %vm86_vm1, %v1165_v2  ;;  %v1371_v14 = vld [vmem:[%s1817_s2 + $0x64] ss:$8 sps:$4 sm:$0xff]   ;;  %v1376_v15 = vld [vmem:[%s1817_s2 + $0x60] ss:$8 sps:$4 sm:$0xff]   ;;  %v1388_v17 = vld [vmem:[%s1817_s2 + $0x50] ss:$8 sps:$4 sm:$0xff]  }
   0x4   :  { %310 = vmatpush1.bf16.msra.mxu1 %v1364_v13  ;;  %v1395_v18 = vld [vmem:[%s1817_s2 + $0x44] ss:$8 sps:$4 sm:$0xff]   ;;  %v1400_v19 = vld [vmem:[%s1817_s2 + $0x40] ss:$8 sps:$4 sm:$0xff]   ;;  %v1407_v20 = vld [vmem:[%s1817_s2 + $0x34] ss:$8 sps:$4 sm:$0xff]  }
   0x5   :  { %311 = vmatprep.subr.bf16.mxu1 %v1371_v14  ;;  %v1412_v21 = vld [vmem:[%s1817_s2 + $0x30] ss:$8 sps:$4 sm:$0xff]   ;;  %v1419_v22 = vld [vmem:[%s1817_s2 + $0x24] ss:$8 sps:$4 sm:$0xff]   ;;  %v1424_v23 = vld [vmem:[%s1817_s2 + $0x20] ss:$8 sps:$4 sm:$0xff]  }
   0x6   :  { %1153 = vmatmul.mubr.msk.bf16.vlgmr.msra.gmra.mxu0 %vm86_vm1, %v1166_v3  ;;  %v1430_v24 = vld [vmem:[%s1817_s2 + $0x14] ss:$8 sps:$4 sm:$0xff]   ;;  %v1436_v25 = vld [vmem:[%s1817_s2 + $0x10] ss:$8 sps:$4 sm:$0xff]   ;;  %v1442_v26 = vld [vmem:[%s1817_s2 + $0x4] ss:$8 sps:$4 sm:$0xff]  }
   0x7   :  { %v1449_v28 = vld [vmem:[%s1817_s2] ss:$8 sps:$4 sm:$0xff]   ;;  %v1454_v49 = vshrl.u32 %v199_v42, 7 }
   0x8   :  { %312 = vmatpush1.bf16.msra.mxu1 %v1376_v15  ;;  %v1460_v59 = vld [vmem:[%s1818_s4] sm:$0xff] }
   0x9   :  { %313 = vmatprep.subr.bf16.mxu1 %v1383_v16  ;;  %v201_v56 = vsub.s32 0, %v1454_v49  ;;  %v209_v61 = vsub.s32 1, %v1454_v49 }
   0xb   :  { %v1465_v63 = vrot.slane %v1460_v59, %v201_v56  ;;  %v1468_v3 = vrot.slane %v1460_v59, %v209_v61 }
   0xc   :  { %314 = vmatpush1.bf16.msra.mxu1 %v1388_v17 }
   0xd   :  { %315 = vmatprep.subr.bf16.mxu1 %v1395_v18 }
  0x10   :  { %316 = vmatpush1.bf16.msra.mxu1 %v1400_v19 }
  0x11   :  { %317 = vmatprep.subr.bf16.mxu1 %v1407_v20 }
  0x14   :  { %318 = vmatpush1.bf16.msra.mxu1 %v1412_v21 }
  0x15   :  { %319 = vmatprep.subr.bf16.mxu1 %v1419_v22 }
  0x18   :  { %320 = vmatpush1.bf16.msra.mxu1 %v1424_v23 }
  0x19   :  { %321 = vmatprep.subr.bf16.mxu1 %v1430_v24 }
  0x1c   :  { %322 = vmatpush1.bf16.msra.mxu1 %v1436_v25 }
  0x1d   :  { %323 = vmatprep.subr.bf16.mxu1 %v1442_v26 }
  0x20   :  { %324 = vmatpush1.bf16.msra.mxu1 %v1449_v28 }
  0x21   :  { %1163 = vmatprep.subr.msk.bf16.mxu1 %vm93_vm0, %v23_v0 }
  0xc6   :  { %v1336_v4 = vpop.f32.mrf.mxu0 }
  0xc7   :  { %v161_v10 = vmul.f32 %v1336_v4, %v1336_v4 }
  0xc8   :  { %v1338_v5 = vpop.f32.mrf.mxu0 }
  0xc9   :  { %146 = vadd.xlane.f32.xlu0 %v1338_v5  ;;  %v159_v6 = vmul.f32 %v1338_v5, %v1338_v5 }
  0xca   :  { %v1343_v7 = vpop.f32.mrf.mxu0 }
  0xcb   :  { %163 = vadd.xlane.f32.xlu1 %v159_v6  ;;  %v162_v11 = vmul.f32 %v1343_v7, %v1343_v7 }
  0xcc   :  { %v1345_v8 = vpop.f32.mrf.mxu0 }
  0xcd   :  { %148 = vadd.xlane.f32.xlu0 %v1345_v8  ;;  %v160_v9 = vmul.f32 %v1345_v8, %v1345_v8 }
  0xcf   :  { %165 = vadd.xlane.f32.xlu1 %v160_v9 }
  0xd1   :  { %150 = vadd.xlane.f32.xlu0 %v1336_v4 }
  0xd3   :  { %152 = vadd.xlane.f32.xlu1 %v1343_v7 }
  0xd5   :  { %167 = vadd.xlane.f32.xlu0 %v161_v10 }
  0xd7   :  { %169 = vadd.xlane.f32.xlu1 %v162_v11 }
 0x152   :  { %v147_v29 = vpop.xlane.xlu0 %146 }
 0x153   :  { %v155_v30 = vmul.f32 0.0078125, %v147_v29 }
 0x154   :  { %v164_v31 = vpop.xlane.xlu1 %163 }
 0x155   :  { %v175_v32 = vmul.f32 %v155_v30, %v155_v30  ;;  %v171_v33 = vmul.f32 0.0078125, %v164_v31  ;;  %v183_v62 = vsub.f32 %v1338_v5, %v155_v30 }
 0x156   :  { %v149_v34 = vpop.xlane.xlu0 %148 }
 0x157   :  { %v179_v35 = vsub.f32 %v171_v33, %v175_v32  ;;  %v156_v36 = vmul.f32 0.0078125, %v149_v34 }
 0x158   :  { %v166_v37 = vpop.xlane.xlu1 %165 }
 0x159   :  { %v187_v38 = vadd.f32 1e-05, %v179_v35  ;;  %v176_v39 = vmul.f32 %v156_v36, %v156_v36  ;;  %v172_v40 = vmul.f32 0.0078125, %v166_v37  ;;  %v184_v9 = vsub.f32 %v1345_v8, %v156_v36 }
 0x15a   :  { %v151_v41 = vpop.xlane.xlu0 %150 }
 0x15b   :  { %1209 = vrsqrt.f32 %v187_v38  ;;  %v180_v43 = vsub.f32 %v172_v40, %v176_v39  ;;  %v157_v44 = vmul.f32 0.0078125, %v151_v41 }
 0x15c   :  { %v153_v45 = vpop.xlane.xlu1 %152 }
 0x15d   :  { %v188_v46 = vadd.f32 1e-05, %v180_v43  ;;  %v158_v47 = vmul.f32 0.0078125, %v153_v45  ;;  %v177_v50 = vmul.f32 %v157_v44, %v157_v44  ;;  %v185_v5 = vsub.f32 %v1336_v4, %v157_v44  ;;  %v1191_v43 = vld [vmem:[%s1816_s0 + $0x10] sm:$0xff]   ;;  %v1192_v45 = vld [vmem:[%s1816_s0 + $0x18] sm:$0xff]  }
 0x15e   :  { %v168_v48 = vpop.xlane.xlu0 %167 }
 0x15f   :  { %1211 = vrsqrt.f32 %v188_v46  ;;  %v173_v51 = vmul.f32 0.0078125, %v168_v48  ;;  %v178_v53 = vmul.f32 %v158_v47, %v158_v47  ;;  %v186_v33 = vsub.f32 %v1343_v7, %v158_v47 }
 0x160   :  { %v170_v52 = vpop.xlane.xlu1 %169  ;;  %v223_v46 = vsub.s32 2, %v1454_v49 }
 0x161   :  { %v181_v54 = vsub.f32 %v173_v51, %v177_v50  ;;  %v174_v55 = vmul.f32 0.0078125, %v170_v52 }
 0x162   :  { %v1498_v47 = vrot.slane %v1460_v59, %v223_v46 }
 0x163   :  { %v189_v57 = vadd.f32 1e-05, %v181_v54  ;;  %v182_v58 = vsub.f32 %v174_v55, %v178_v53 }
 0x165   :  { %1213 = vrsqrt.f32 %v189_v57  ;;  %v190_v60 = vadd.f32 1e-05, %v182_v58 }
 0x167   :  { %1215 = vrsqrt.f32 %v190_v60 }
 0x168   :  { %v1210_v0 = vpop.eup %1209 }
 0x169   :  { %v195_v2 = vmul.f32 %v1210_v0, %v183_v62 }
 0x16b   :  { %v203_v6 = vmul.f32 %v1465_v63, %v195_v2 }
 0x16c   :  { %v1212_v10 = vpop.eup %1211 }
 0x16d   :  { %v196_v11 = vmul.f32 %v1212_v10, %v184_v9  ;;  %v211_v29 = vadd.f32 %v1468_v3, %v203_v6 }
 0x16f   :  { %v204_v31 = vmul.f32 %v1465_v63, %v196_v11  ;;  %1217 = vtanh.f32 %v211_v29 }
 0x171   :  { %v212_v30 = vadd.f32 %v1468_v3, %v204_v31 }
 0x172   :  { %v1214_v32 = vpop.eup %1213 }
 0x173   :  { %v197_v34 = vmul.f32 %v1214_v32, %v185_v5  ;;  %1219 = vtanh.f32 %v212_v30 }
 0x174   :  { %v1216_v35 = vpop.eup %1215 }
 0x175   :  { %v205_v37 = vmul.f32 %v1465_v63, %v197_v34  ;;  %v198_v8 = vmul.f32 %v1216_v35, %v186_v33 }
 0x177   :  { %v206_v36 = vmul.f32 %v1465_v63, %v198_v8  ;;  %v213_v38 = vadd.f32 %v1468_v3, %v205_v37 }
 0x179   :  { %v214_v39 = vadd.f32 %v1468_v3, %v206_v36  ;;  %1221 = vtanh.f32 %v213_v38 }
 0x17b   :  { %1223 = vtanh.f32 %v214_v39 }
 0x17c   :  { %v1218_v4 = vpop.eup %1217 }
 0x180   :  { %v1220_v40 = vpop.eup %1219 }
 0x181   :  { %v219_v41 = vpack.c.bf16 %v1220_v40, %v1218_v4 }
 0x183   :  { %342 = vmatmul.mubr.bf16.vlgmr.msra.gmra.mxu1 %v219_v41 }
 0x184   :  { %351 = vmatprep.mubr.bf16.mxu1 %v1289_v27  ;;  %1157 = vmatpush3.bf16.msra.mxu1 %v1325_v1  ;;  %v1495_v1 = vld [vmem:[%s1818_s4 + $0x8] sm:$0xff] }
 0x185   :  { %v1501_v48 = vrot.slane %v1495_v1, %v223_v46  ;;  %v1193_v46 = vld [vmem:[%s1819_s3 + $0x78] sm:$0xff]  }
 0x186   :  { %v1222_v7 = vpop.eup %1221  ;;  %1091 = vmatprep.subr.bf16.mxu0 %v1193_v46  ;;  %1122 = vmatprep.subr.bf16.mxu1 %v1193_v46 }
 0x188   :  { %v1224_v42 = vpop.eup %1223 }
 0x189   :  { %v220_v44 = vpack.c.bf16 %v1224_v42, %v1222_v7 }
 0x18b   :  { %352 = vmatmul.mubr.bf16.gmra.mxu1 %v220_v44 }
 0x18c   :  { %1158 = vmatprep.mubr.msk.bf16.mxu1 %vm86_vm1, %v1191_v43 }
 0x193   :  { %1159 = vmatmul.mubr.msk.bf16.vlgmr.msra.gmra.mxu1 %vm86_vm1, %v1192_v45 }
 0x243   :  { %v343_v50 = vpop.f32.mrf.mxu1 }
 0x244   :  { %v1504_v52 = vadd.f32 %v343_v50, %v1498_v47 }
 0x245   :  { %v345_v51 = vpop.f32.mrf.mxu1 }
 0x246   :  { %v1507_v53 = vadd.f32 %v345_v51, %v1501_v48  ;;  %v379_v61 = vmul.f32 %v1504_v52, %v1504_v52  ;;  %v1194_v51 = vld [vmem:[%s1819_s3 + $0x38] sm:$0xff]  }
 0x247   :  { %v347_v54 = vpop.f32.mrf.mxu1  ;;  %1092 = vmatpush3.bf16.msra.mxu0 %v1194_v51  ;;  %1123 = vmatpush3.bf16.msra.mxu1 %v1194_v51 }
 0x248   :  { %v362_v55 = vadd.f32 %v1507_v53, %v1504_v52  ;;  %v380_v56 = vmul.f32 %v1507_v53, %v1507_v53  ;;  %v1514_v58 = vadd.f32 %v347_v54, %v1498_v47  ;;  %v1195_v54 = vld [vmem:[%s1819_s3 + $0x70] sm:$0xff]  }
 0x249   :  { %v349_v57 = vpop.f32.mrf.mxu1  ;;  %1093 = vmatprep.subr.bf16.mxu0 %v1195_v54  ;;  %1124 = vmatprep.subr.bf16.mxu1 %v1195_v54 }
 0x24a   :  { %v1517_v60 = vadd.f32 %v349_v57, %v1501_v48  ;;  %363 = vadd.xlane.f32.xlu0 %v362_v55  ;;  %v387_v2 = vadd.f32 %v380_v56, %v379_v61  ;;  %v381_v29 = vmul.f32 %v1514_v58, %v1514_v58  ;;  %v1196_v55 = vld [vmem:[%s1819_s3 + $0x30] sm:$0xff]   ;;  %v1197_v56 = vld [vmem:[%s1819_s3 + $0x68] sm:$0xff]   ;;  %v1199_v61 = vld [vmem:[%s1819_s3 + $0x60] sm:$0xff]  }
 0x24b   :  { %v353_v62 = vpop.f32.mrf.mxu1  ;;  %1094 = vmatpush3.bf16.msra.mxu0 %v1196_v55  ;;  %1125 = vmatpush3.bf16.msra.mxu1 %v1196_v55  ;;  %v1198_v57 = vld [vmem:[%s1819_s3 + $0x28] sm:$0xff]  }
 0x24c   :  { %v365_v0 = vadd.f32 %v1517_v60, %v1514_v58  ;;  %v382_v6 = vmul.f32 %v1517_v60, %v1517_v60  ;;  %v1526_v10 = vadd.f32 %v353_v62, %v1498_v47  ;;  %1095 = vmatprep.subr.bf16.mxu0 %v1197_v56  ;;  %1126 = vmatprep.subr.bf16.mxu1 %v1197_v56  ;;  %v1200_v62 = vld [vmem:[%s1819_s3 + $0x20] sm:$0xff]  }
 0x24d   :  { %v355_v9 = vpop.f32.mrf.mxu1 }
 0x24e   :  { %v1529_v11 = vadd.f32 %v355_v9, %v1501_v48  ;;  %366 = vadd.xlane.f32.xlu1 %v365_v0  ;;  %388 = vadd.xlane.f32.xlu0 %v387_v2  ;;  %v390_v5 = vadd.f32 %v382_v6, %v381_v29  ;;  %v383_v37 = vmul.f32 %v1526_v10, %v1526_v10  ;;  %v1201_v0 = vld [vmem:[%s1819_s3 + $0x58] sm:$0xff]   ;;  %v1203_v6 = vld [vmem:[%s1819_s3 + $0x50] sm:$0xff]   ;;  %v1205_v29 = vld [vmem:[%s1819_s3 + $0x48] sm:$0xff]  }
 0x24f   :  { %v357_v31 = vpop.f32.mrf.mxu1  ;;  %1096 = vmatpush3.bf16.msra.mxu0 %v1198_v57  ;;  %1127 = vmatpush3.bf16.msra.mxu1 %v1198_v57  ;;  %v1202_v2 = vld [vmem:[%s1819_s3 + $0x18] sm:$0xff]   ;;  %v1204_v9 = vld [vmem:[%s1819_s3 + $0x10] sm:$0xff]  }
 0x250   :  { %v368_v30 = vadd.f32 %v1529_v11, %v1526_v10  ;;  %v384_v32 = vmul.f32 %v1529_v11, %v1529_v11  ;;  %v1538_v34 = vadd.f32 %v357_v31, %v1498_v47  ;;  %1097 = vmatprep.subr.bf16.mxu0 %v1199_v61  ;;  %1128 = vmatprep.subr.bf16.mxu1 %v1199_v61  ;;  %v1206_v31 = vld [vmem:[%s1819_s3 + $0x8] sm:$0xff]  }
 0x251   :  { %v359_v33 = vpop.f32.mrf.mxu1 }
 0x252   :  { %v1541_v35 = vadd.f32 %v359_v33, %v1501_v48  ;;  %391 = vadd.xlane.f32.xlu1 %v390_v5  ;;  %369 = vadd.xlane.f32.xlu0 %v368_v30  ;;  %v393_v38 = vadd.f32 %v384_v32, %v383_v37  ;;  %v385_v40 = vmul.f32 %v1538_v34, %v1538_v34  ;;  %v1207_v5 = vld [vmem:[%s1819_s3 + $0x40] sm:$0xff]  }
 0x253   :  { %v1545_v8 = vpop.f32.mrf.mxu1  ;;  %1098 = vmatpush3.bf16.msra.mxu0 %v1200_v62  ;;  %1129 = vmatpush3.bf16.msra.mxu1 %v1200_v62  ;;  %v1208_v30 = vld [vmem:[%s1819_s3] sm:$0xff]  }
 0x254   :  { %v371_v36 = vadd.f32 %v1541_v35, %v1538_v34  ;;  %v386_v39 = vmul.f32 %v1541_v35, %v1541_v35  ;;  %v731_v45 = vmul.f32 %v1545_v8, %v1545_v8  ;;  %1099 = vmatprep.subr.bf16.mxu0 %v1201_v0  ;;  %1130 = vmatprep.subr.bf16.mxu1 %v1201_v0 }
 0x255   :  { %v1551_v4 = vpop.f32.mrf.mxu1 }
 0x256   :  { %372 = vadd.xlane.f32.xlu1 %v371_v36  ;;  %394 = vadd.xlane.f32.xlu0 %v393_v38  ;;  %v396_v7 = vadd.f32 %v386_v39, %v385_v40  ;;  %v729_v42 = vmul.f32 %v1551_v4, %v1551_v4 }
 0x257   :  { %v1555_v41 = vpop.f32.mrf.mxu1  ;;  %1100 = vmatpush3.bf16.msra.mxu0 %v1202_v2  ;;  %1131 = vmatpush3.bf16.msra.mxu1 %v1202_v2 }
 0x258   :  { %v732_v50 = vmul.f32 %v1555_v41, %v1555_v41  ;;  %1101 = vmatprep.subr.bf16.mxu0 %v1203_v6  ;;  %1132 = vmatprep.subr.bf16.mxu1 %v1203_v6 }
 0x259   :  { %v1560_v43 = vpop.f32.mrf.mxu1 }
 0x25a   :  { %397 = vadd.xlane.f32.xlu1 %v396_v7  ;;  %717 = vadd.xlane.f32.xlu0 %v1551_v4  ;;  %v730_v44 = vmul.f32 %v1560_v43, %v1560_v43 }
 0x25b   :  { %1102 = vmatpush3.bf16.msra.mxu0 %v1204_v9  ;;  %1133 = vmatpush3.bf16.msra.mxu1 %v1204_v9 }
 0x25c   :  { %1103 = vmatprep.subr.bf16.mxu0 %v1205_v29  ;;  %1134 = vmatprep.subr.bf16.mxu1 %v1205_v29 }
 0x25e   :  { %719 = vadd.xlane.f32.xlu1 %v1560_v43  ;;  %733 = vadd.xlane.f32.xlu0 %v729_v42 }
 0x25f   :  { %1104 = vmatpush3.bf16.msra.mxu0 %v1206_v31  ;;  %1135 = vmatpush3.bf16.msra.mxu1 %v1206_v31 }
 0x260   :  { %1105 = vmatprep.subr.bf16.mxu0 %v1207_v5  ;;  %1136 = vmatprep.subr.bf16.mxu1 %v1207_v5  ;;  %v437_v5 = vsub.s32 3, %v1454_v49 }
 0x262   :  { %735 = vadd.xlane.f32.xlu1 %v730_v44  ;;  %721 = vadd.xlane.f32.xlu0 %v1545_v8 }
 0x263   :  { %1106 = vmatpush3.bf16.msra.mxu0 %v1208_v30  ;;  %1137 = vmatpush3.bf16.msra.mxu1 %v1208_v30 }
 0x264   :  { %783 = vmatprep.subr.bf16.mxu0 %v1359_v12 }
 0x266   :  { %723 = vadd.xlane.f32.xlu1 %v1555_v41  ;;  %737 = vadd.xlane.f32.xlu0 %v731_v45 }
 0x26a   :  { %739 = vadd.xlane.f32.xlu1 %v732_v50 }
 0x2d3   :  { %v364_v32 = vpop.xlane.xlu0 %363 }
 0x2d4   :  { %v375_v33 = vmul.f32 0.00390625, %v364_v32 }
 0x2d6   :  { %v403_v38 = vmul.f32 %v375_v33, %v375_v33 }
 0x2d7   :  { %v389_v37 = vpop.xlane.xlu0 %388  ;;  %v367_v36 = vpop.xlane.xlu1 %366 }
 0x2d8   :  { %v399_v39 = vmul.f32 0.00390625, %v389_v37  ;;  %v376_v40 = vmul.f32 0.00390625, %v367_v36  ;;  %v453_v37 = vsub.s32 4, %v1454_v49 }
 0x2da   :  { %v407_v7 = vsub.f32 %v399_v39, %v403_v38  ;;  %v404_v50 = vmul.f32 %v376_v40, %v376_v40  ;;  %v1631_v39 = vrot.slane %v1460_v59, %v437_v5 }
 0x2db   :  { %v370_v42 = vpop.xlane.xlu0 %369  ;;  %v392_v44 = vpop.xlane.xlu1 %391 }
 0x2dc   :  { %v419_v45 = vadd.f32 1e-05, %v407_v7  ;;  %v1620_v46 = vmul.f32 0.00390625, %v370_v42  ;;  %v400_v51 = vmul.f32 0.00390625, %v392_v44  ;;  %v1634_v7 = vrot.slane %v1495_v1, %v437_v5 }
 0x2dd   :  { %v411_v42 = vsub.f32 %v1504_v52, %v375_v33  ;;  %v412_v44 = vsub.f32 %v1507_v53, %v375_v33 }
 0x2de   :  { %1225 = vrsqrt.f32 %v419_v45  ;;  %v408_v54 = vsub.f32 %v400_v51, %v404_v50  ;;  %v405_v57 = vmul.f32 %v1620_v46, %v1620_v46 }
 0x2df   :  { %v395_v55 = vpop.xlane.xlu0 %394  ;;  %v373_v56 = vpop.xlane.xlu1 %372 }
 0x2e0   :  { %v420_v12 = vadd.f32 1e-05, %v408_v54  ;;  %v401_v61 = vmul.f32 0.00390625, %v395_v55  ;;  %v1624_v62 = vmul.f32 0.00390625, %v373_v56  ;;  %v1641_v54 = vrot.slane %v1460_v59, %v453_v37 }
 0x2e2   :  { %1227 = vrsqrt.f32 %v420_v12  ;;  %v409_v0 = vsub.f32 %v401_v61, %v405_v57  ;;  %v406_v29 = vmul.f32 %v1624_v62, %v1624_v62  ;;  %v1644_v12 = vrot.slane %v1495_v1, %v453_v37 }
 0x2e3   :  { %v718_v2 = vpop.xlane.xlu0 %717  ;;  %v398_v6 = vpop.xlane.xlu1 %397  ;;  %v415_v37 = vsub.f32 %v1526_v10, %v1620_v46 }
 0x2e4   :  { %v421_v9 = vadd.f32 1e-05, %v409_v0  ;;  %v402_v31 = vmul.f32 0.00390625, %v398_v6  ;;  %v1646_v57 = vmul.f32 0.0078125, %v718_v2  ;;  %v413_v0 = vsub.f32 %v1514_v58, %v376_v40 }
 0x2e5   :  { %v414_v6 = vsub.f32 %v1517_v60, %v376_v40  ;;  %v416_v58 = vsub.f32 %v1529_v11, %v1620_v46 }
 0x2e6   :  { %1229 = vrsqrt.f32 %v421_v9  ;;  %v410_v30 = vsub.f32 %v402_v31, %v406_v29  ;;  %v745_v1 = vmul.f32 %v1646_v57, %v1646_v57 }
 0x2e7   :  { %v720_v32 = vpop.xlane.xlu1 %719  ;;  %v734_v38 = vpop.xlane.xlu0 %733 }
 0x2e8   :  { %v422_v36 = vadd.f32 1e-05, %v410_v30  ;;  %v1638_v50 = vmul.f32 0.0078125, %v720_v32  ;;  %v741_v31 = vmul.f32 0.0078125, %v734_v38  ;;  %v417_v38 = vsub.f32 %v1538_v34, %v1624_v62 }
 0x2ea   :  { %1231 = vrsqrt.f32 %v422_v36  ;;  %v746_v52 = vmul.f32 %v1638_v50, %v1638_v50 }
 0x2eb   :  { %v1226_v45 = vpop.eup %1225  ;;  %v736_v51 = vpop.xlane.xlu1 %735 }
 0x2ec   :  { %v427_v55 = vmul.f32 %v1226_v45, %v411_v42  ;;  %v428_v56 = vmul.f32 %v1226_v45, %v412_v44  ;;  %v742_v61 = vmul.f32 0.0078125, %v736_v51  ;;  %v722_v9 = vpop.xlane.xlu0 %721  ;;  %v418_v45 = vsub.f32 %v1541_v35, %v1624_v62 }
 0x2ed   :  { %v749_v51 = vsub.f32 %v741_v31, %v745_v1 }
 0x2ee   :  { %v443_v53 = vmul.f32 %v1631_v39, %v427_v55  ;;  %v444_v33 = vmul.f32 %v1634_v7, %v428_v56  ;;  %v750_v36 = vsub.f32 %v742_v61, %v746_v52  ;;  %v1671_v52 = vmul.f32 0.0078125, %v722_v9 }
 0x2ef   :  { %v1228_v29 = vpop.eup %1227  ;;  %v724_v2 = vpop.xlane.xlu1 %723 }
 0x2f0   :  { %v429_v5 = vmul.f32 %v1228_v29, %v413_v0  ;;  %v430_v30 = vmul.f32 %v1228_v29, %v414_v6  ;;  %v459_v32 = vadd.f32 %v1641_v54, %v443_v53  ;;  %v460_v42 = vadd.f32 %v1644_v12, %v444_v33  ;;  %v738_v61 = vpop.xlane.xlu0 %737 }
 0x2f1   :  { %v1668_v55 = vmul.f32 0.0078125, %v724_v2  ;;  %v758_v53 = vadd.f32 1e-05, %v750_v36  ;;  %v757_v29 = vadd.f32 1e-05, %v749_v51  ;;  %v747_v9 = vmul.f32 %v1671_v52, %v1671_v52 }
 0x2f2   :  { %v445_v60 = vmul.f32 %v1631_v39, %v429_v5  ;;  %v446_v40 = vmul.f32 %v1634_v7, %v430_v30  ;;  %1233 = vtanh.f32 %v459_v32  ;;  %v743_v1 = vmul.f32 0.0078125, %v738_v61 }
 0x2f3   :  { %v1230_v44 = vpop.eup %1229  ;;  %v740_v10 = vpop.xlane.xlu1 %739  ;;  %v748_v33 = vmul.f32 %v1668_v55, %v1668_v55  ;;  %1235 = vtanh.f32 %v460_v42 }
 0x2f4   :  { %v461_v56 = vadd.f32 %v1641_v54, %v445_v60  ;;  %v431_v11 = vmul.f32 %v1230_v44, %v415_v37  ;;  %v432_v46 = vmul.f32 %v1230_v44, %v416_v58  ;;  %v462_v34 = vadd.f32 %v1644_v12, %v446_v40 }
 0x2f5   :  { %v744_v0 = vmul.f32 0.0078125, %v740_v10  ;;  %v751_v58 = vsub.f32 %v743_v1, %v747_v9 }
 0x2f6   :  { %v447_v35 = vmul.f32 %v1631_v39, %v431_v11  ;;  %v448_v62 = vmul.f32 %v1634_v7, %v432_v46  ;;  %1237 = vtanh.f32 %v462_v34 }
 0x2f7   :  { %v1232_v6 = vpop.eup %1231  ;;  %1239 = vtanh.f32 %v461_v56  ;;  %v752_v36 = vsub.f32 %v744_v0, %v748_v33  ;;  %v759_v44 = vadd.f32 1e-05, %v751_v58 }
 0x2f8   :  { %v433_v31 = vmul.f32 %v1232_v6, %v417_v38  ;;  %v434_v2 = vmul.f32 %v1232_v6, %v418_v45  ;;  %v464_v5 = vadd.f32 %v1644_v12, %v448_v62  ;;  %v463_v30 = vadd.f32 %v1641_v54, %v447_v35 }
 0x2f9   :  { %1241 = vrsqrt.f32 %v758_v53  ;;  %v760_v42 = vadd.f32 1e-05, %v752_v36  ;;  %v754_v53 = vsub.f32 %v1560_v43, %v1638_v50  ;;  %v753_v35 = vsub.f32 %v1551_v4, %v1646_v57 }
 0x2fa   :  { %v449_v32 = vmul.f32 %v1631_v39, %v433_v31  ;;  %v450_v37 = vmul.f32 %v1634_v7, %v434_v2  ;;  %1243 = vrsqrt.f32 %v757_v29  ;;  %v756_v4 = vsub.f32 %v1555_v41, %v1668_v55 }
 0x2fb   :  { %1245 = vtanh.f32 %v464_v5 }
 0x2fc   :  { %v466_v60 = vadd.f32 %v1644_v12, %v450_v37  ;;  %v465_v40 = vadd.f32 %v1641_v54, %v449_v32  ;;  %1247 = vtanh.f32 %v463_v30 }
 0x2fe   :  { %1249 = vtanh.f32 %v466_v60 }
 0x2ff   :  { %1251 = vtanh.f32 %v465_v40  ;;  %v1234_v38 = vpop.eup %1233 }
 0x300   :  { %1253 = vrsqrt.f32 %v760_v42  ;;  %v1236_v45 = vpop.eup %1235 }
 0x301   :  { %1255 = vrsqrt.f32 %v759_v44 }
 0x303   :  { %v1238_v51 = vpop.eup %1237 }
 0x304   :  { %v1240_v10 = vpop.eup %1239  ;;  %v476_v56 = vpack.c.bf16 %v1238_v51, %v1236_v45 }
 0x305   :  { %v475_v11 = vpack.c.bf16 %v1240_v10, %v1234_v38 }
 0x306   :  { %v1242_v46 = vpop.eup %1241  ;;  %611 = vmatprep.mubr.bf16.mxu0 %v476_v56 }
 0x307   :  { %v1244_v61 = vpop.eup %1243  ;;  %612 = vmatmul.mubr.bf16.vlgmr.msra.gmra.mxu0 %v475_v11  ;;  %v766_v62 = vmul.f32 %v1242_v46, %v754_v53 }
 0x308   :  { %v1246_v33 = vpop.eup %1245  ;;  %784 = vmatpush1.bf16.msra.mxu0 %v1364_v13  ;;  %v765_v29 = vmul.f32 %v1244_v61, %v753_v35 }
 0x309   :  { %v1248_v34 = vpop.eup %1247  ;;  %785 = vmatprep.subr.bf16.mxu0 %v1371_v14  ;;  %v770_v43 = vmul.f32 %v766_v62, %v1465_v63 }
 0x30a   :  { %v769_v50 = vmul.f32 %v765_v29, %v1465_v63 }
 0x30b   :  { %v1250_v0 = vpop.eup %1249  ;;  %v774_v57 = vadd.f32 %v770_v43, %v1468_v3 }
 0x30c   :  { %v1252_v6 = vpop.eup %1251  ;;  %v478_v9 = vpack.c.bf16 %v1250_v0, %v1246_v33  ;;  %786 = vmatpush1.bf16.msra.mxu0 %v1376_v15  ;;  %v755_v15 = vsub.f32 %v1545_v8, %v1671_v52 }
 0x30d   :  { %v477_v1 = vpack.c.bf16 %v1252_v6, %v1248_v34  ;;  %787 = vmatprep.subr.bf16.mxu0 %v1383_v16  ;;  %v1254_v13 = vpop.eup %1253  ;;  %v773_v16 = vadd.f32 %v769_v50, %v1468_v3  ;;  %1257 = vtanh.f32 %v774_v57 }
 0x30e   :  { %619 = vmatprep.mubr.bf16.mxu0 %v478_v9  ;;  %v1256_v14 = vpop.eup %1255  ;;  %v768_v31 = vmul.f32 %v1254_v13, %v756_v4 }
 0x30f   :  { %620 = vmatmul.mubr.bf16.gmra.mxu0 %v477_v1  ;;  %v767_v2 = vmul.f32 %v1256_v14, %v755_v15  ;;  %1259 = vtanh.f32 %v773_v16 }
 0x310   :  { %788 = vmatpush1.bf16.msra.mxu0 %v1388_v17  ;;  %815 = vmatprep.mubr.bf16.mxu0 %v1289_v27  ;;  %v772_v41 = vmul.f32 %v768_v31, %v1465_v63 }
 0x311   :  { %789 = vmatprep.subr.bf16.mxu0 %v1395_v18  ;;  %v771_v17 = vmul.f32 %v767_v2, %v1465_v63 }
 0x312   :  { %v776_v8 = vadd.f32 %v772_v41, %v1468_v3 }
 0x313   :  { %v775_v18 = vadd.f32 %v771_v17, %v1468_v3 }
 0x314   :  { %790 = vmatpush1.bf16.msra.mxu0 %v1400_v19  ;;  %1261 = vtanh.f32 %v776_v8 }
 0x315   :  { %791 = vmatprep.subr.bf16.mxu0 %v1407_v20  ;;  %1263 = vtanh.f32 %v775_v18 }
 0x318   :  { %792 = vmatpush1.bf16.msra.mxu0 %v1412_v21 }
 0x319   :  { %793 = vmatprep.subr.bf16.mxu0 %v1419_v22 }
 0x31a   :  { %v1258_v19 = vpop.eup %1257 }
 0x31c   :  { %794 = vmatpush1.bf16.msra.mxu0 %v1424_v23  ;;  %v1260_v20 = vpop.eup %1259 }
 0x31d   :  { %795 = vmatprep.subr.bf16.mxu0 %v1430_v24  ;;  %v781_v21 = vpack.c.bf16 %v1258_v19, %v1260_v20  ;;  %v481_v24 = vsub.s32 5, %v1454_v49 }
 0x320   :  { %796 = vmatpush1.bf16.msra.mxu0 %v1436_v25  ;;  %v1721_v25 = vrot.slane %v1460_v59, %v481_v24 }
 0x321   :  { %797 = vmatprep.subr.bf16.mxu0 %v1442_v26  ;;  %v1262_v22 = vpop.eup %1261 }
 0x322   :  { %v1264_v63 = vpop.eup %1263 }
 0x323   :  { %v782_v3 = vpack.c.bf16 %v1262_v22, %v1264_v63 }
 0x324   :  { %798 = vmatpush1.bf16.msra.mxu0 %v1449_v28 }
 0x327   :  { %816 = vmatmul.mubr.bf16.vlgmr.msra.gmra.mxu0 %v781_v21 }
 0x328   :  { %825 = vmatprep.mubr.bf16.mxu0 %v1289_v27 }
 0x32f   :  { %826 = vmatmul.mubr.bf16.gmra.mxu0 %v782_v3 }
 0x3c7   :  { %v1107_v23 = vpop.f32.mrf.mxu0 }
 0x3c9   :  { %v1108_v55 = vpop.f32.mrf.mxu0 }
 0x3ca   :  { %v1109_v26 = vadd.f32 %v1108_v55, %v1107_v23 }
 0x3cb   :  { %v1110_v52 = vpop.f32.mrf.mxu0 }
 0x3cc   :  { %v614_v32 = vadd.f32 %v1109_v26, %v1721_v25 }
 0x3cd   :  { %v1111_v5 = vpop.f32.mrf.mxu0 }
 0x3ce   :  { %v1112_v30 = vadd.f32 %v1111_v5, %v1110_v52 }
 0x3cf   :  { %v1113_v28 = vpop.f32.mrf.mxu0 }
 0x3d0   :  { %v617_v27 = vadd.f32 %v1112_v30, %v1721_v25 }
 0x3d1   :  { %v1114_v37 = vpop.f32.mrf.mxu0 }
 0x3d2   :  { %v1068_v36 = vpack.c.bf16 %v617_v27, %v614_v32  ;;  %v1115_v49 = vadd.f32 %v1114_v37, %v1113_v28 }
 0x3d3   :  { %v1116_v58 = vpop.f32.mrf.mxu0 }
 0x3d4   :  { %1069 = vst [vmem:[%s1820_s5] sm:$0xff] %v1068_v36   ;;  %v622_v59 = vadd.f32 %v1115_v49, %v1721_v25 }
 0x3d5   :  { %v1117_v60 = vpop.f32.mrf.mxu0 }
 0x3d6   :  { %v1118_v40 = vadd.f32 %v1117_v60, %v1116_v58 }
 0x3d8   :  { %v625_v42 = vadd.f32 %v1118_v40, %v1721_v25 }
 0x3da   :  { %v1073_v44 = vpack.c.bf16 %v625_v42, %v622_v59 }
 0x3dc   :  { %1085 = vst [vmem:[%s1820_s5 + $0x8] sm:$0xff] %v1073_v44  }
 0x3e7   :  { %v817_v38 = vpop.f32.mrf.mxu0 }
 0x3e8   :  { %v1734_v51 = vadd.f32 %v817_v38, %v1498_v47 }
 0x3e9   :  { %v819_v45 = vpop.f32.mrf.mxu0 }
 0x3ea   :  { %v1737_v10 = vadd.f32 %v819_v45, %v1501_v48  ;;  %v852_v34 = vmul.f32 %v1734_v51, %v1734_v51 }
 0x3eb   :  { %v821_v56 = vpop.f32.mrf.mxu0 }
 0x3ec   :  { %v836_v11 = vadd.f32 %v1737_v10, %v1734_v51  ;;  %v853_v46 = vmul.f32 %v1737_v10, %v1737_v10  ;;  %v1744_v53 = vadd.f32 %v821_v56, %v1498_v47 }
 0x3ed   :  { %v823_v61 = vpop.f32.mrf.mxu0 }
 0x3ee   :  { %v1747_v33 = vadd.f32 %v823_v61, %v1501_v48  ;;  %837 = vadd.xlane.f32.xlu0 %v836_v11  ;;  %v860_v0 = vadd.f32 %v853_v46, %v852_v34  ;;  %v854_v43 = vmul.f32 %v1744_v53, %v1744_v53 }
 0x3ef   :  { %v827_v35 = vpop.f32.mrf.mxu0 }
 0x3f0   :  { %v839_v62 = vadd.f32 %v1747_v33, %v1744_v53  ;;  %v855_v6 = vmul.f32 %v1747_v33, %v1747_v33  ;;  %v1756_v9 = vadd.f32 %v827_v35, %v1498_v47 }
 0x3f1   :  { %v829_v29 = vpop.f32.mrf.mxu0 }
 0x3f2   :  { %v1759_v1 = vadd.f32 %v829_v29, %v1501_v48  ;;  %840 = vadd.xlane.f32.xlu1 %v839_v62  ;;  %861 = vadd.xlane.f32.xlu0 %v860_v0  ;;  %v863_v50 = vadd.f32 %v855_v6, %v854_v43  ;;  %v856_v16 = vmul.f32 %v1756_v9, %v1756_v9 }
 0x3f3   :  { %v831_v13 = vpop.f32.mrf.mxu0 }
 0x3f4   :  { %v842_v4 = vadd.f32 %v1759_v1, %v1756_v9  ;;  %v857_v14 = vmul.f32 %v1759_v1, %v1759_v1  ;;  %v1768_v57 = vadd.f32 %v831_v13, %v1498_v47 }
 0x3f5   :  { %v833_v15 = vpop.f32.mrf.mxu0 }
 0x3f6   :  { %v1771_v31 = vadd.f32 %v833_v15, %v1501_v48  ;;  %864 = vadd.xlane.f32.xlu1 %v863_v50  ;;  %843 = vadd.xlane.f32.xlu0 %v842_v4  ;;  %v866_v41 = vadd.f32 %v857_v14, %v856_v16  ;;  %v858_v47 = vmul.f32 %v1768_v57, %v1768_v57 }
 0x3f8   :  { %v845_v2 = vadd.f32 %v1771_v31, %v1768_v57  ;;  %v859_v17 = vmul.f32 %v1771_v31, %v1771_v31 }
 0x3fa   :  { %846 = vadd.xlane.f32.xlu1 %v845_v2  ;;  %867 = vadd.xlane.f32.xlu0 %v866_v41  ;;  %v869_v8 = vadd.f32 %v859_v17, %v858_v47 }
 0x3fe   :  { %870 = vadd.xlane.f32.xlu1 %v869_v8 }
 0x477   :  { %v838_v48 = vpop.xlane.xlu0 %837 }
 0x478   :  { %v848_v18 = vmul.f32 0.00390625, %v838_v48 }
 0x47a   :  { %v876_v21 = vmul.f32 %v848_v18, %v848_v18  ;;  %v884_v45 = vsub.f32 %v1734_v51, %v848_v18  ;;  %v885_v56 = vsub.f32 %v1737_v10, %v848_v18 }
 0x47b   :  { %v862_v19 = vpop.xlane.xlu0 %861  ;;  %v841_v20 = vpop.xlane.xlu1 %840 }
 0x47c   :  { %v872_v22 = vmul.f32 0.00390625, %v862_v19  ;;  %v849_v63 = vmul.f32 0.00390625, %v841_v20 }
 0x47e   :  { %v880_v3 = vsub.f32 %v872_v22, %v876_v21  ;;  %v877_v26 = vmul.f32 %v849_v63, %v849_v63  ;;  %v886_v62 = vsub.f32 %v1744_v53, %v849_v63  ;;  %v887_v0 = vsub.f32 %v1747_v33, %v849_v63 }
 0x47f   :  { %v844_v23 = vpop.xlane.xlu0 %843  ;;  %v865_v24 = vpop.xlane.xlu1 %864 }
 0x480   :  { %v892_v55 = vadd.f32 1e-05, %v880_v3  ;;  %v850_v52 = vmul.f32 0.00390625, %v844_v23  ;;  %v873_v5 = vmul.f32 0.00390625, %v865_v24 }
 0x482   :  { %1265 = vrsqrt.f32 %v892_v55  ;;  %v881_v30 = vsub.f32 %v873_v5, %v877_v26  ;;  %v878_v37 = vmul.f32 %v850_v52, %v850_v52  ;;  %v888_v10 = vsub.f32 %v1756_v9, %v850_v52 }
 0x483   :  { %v868_v28 = vpop.xlane.xlu0 %867  ;;  %v847_v32 = vpop.xlane.xlu1 %846  ;;  %v889_v50 = vsub.f32 %v1759_v1, %v850_v52 }
 0x484   :  { %v893_v27 = vadd.f32 1e-05, %v881_v30  ;;  %v874_v36 = vmul.f32 0.00390625, %v868_v28  ;;  %v851_v58 = vmul.f32 0.00390625, %v847_v32 }
 0x486   :  { %1267 = vrsqrt.f32 %v893_v27  ;;  %v882_v49 = vsub.f32 %v874_v36, %v878_v37  ;;  %v879_v59 = vmul.f32 %v851_v58, %v851_v58  ;;  %v890_v41 = vsub.f32 %v1768_v57, %v851_v58 }
 0x487   :  { %v871_v60 = vpop.xlane.xlu1 %870  ;;  %v891_v1 = vsub.f32 %v1771_v31, %v851_v58 }
 0x488   :  { %v894_v40 = vadd.f32 1e-05, %v882_v49  ;;  %v875_v42 = vmul.f32 0.00390625, %v871_v60 }
 0x48a   :  { %1269 = vrsqrt.f32 %v894_v40  ;;  %v883_v44 = vsub.f32 %v875_v42, %v879_v59 }
 0x48c   :  { %v895_v38 = vadd.f32 1e-05, %v883_v44 }
 0x48e   :  { %1271 = vrsqrt.f32 %v895_v38 }
 0x48f   :  { %v1266_v11 = vpop.eup %1265 }
 0x490   :  { %v900_v46 = vmul.f32 %v1266_v11, %v884_v45  ;;  %v901_v61 = vmul.f32 %v1266_v11, %v885_v56 }
 0x492   :  { %v908_v34 = vmul.f32 %v900_v46, %v1631_v39  ;;  %v909_v35 = vmul.f32 %v901_v61, %v1634_v7 }
 0x493   :  { %v1268_v6 = vpop.eup %1267 }
 0x494   :  { %v902_v29 = vmul.f32 %v1268_v6, %v886_v62  ;;  %v903_v43 = vmul.f32 %v1268_v6, %v887_v0  ;;  %v917_v13 = vadd.f32 %v909_v35, %v1644_v12  ;;  %v916_v51 = vadd.f32 %v908_v34, %v1641_v54 }
 0x496   :  { %v910_v4 = vmul.f32 %v902_v29, %v1631_v39  ;;  %v911_v14 = vmul.f32 %v903_v43, %v1634_v7  ;;  %1273 = vtanh.f32 %v917_v13 }
 0x497   :  { %v1270_v15 = vpop.eup %1269  ;;  %1275 = vtanh.f32 %v916_v51 }
 0x498   :  { %v918_v53 = vadd.f32 %v910_v4, %v1641_v54  ;;  %v904_v33 = vmul.f32 %v1270_v15, %v888_v10  ;;  %v905_v16 = vmul.f32 %v1270_v15, %v889_v50  ;;  %v919_v2 = vadd.f32 %v911_v14, %v1644_v12 }
 0x49a   :  { %v912_v17 = vmul.f32 %v904_v33, %v1631_v39  ;;  %v913_v9 = vmul.f32 %v905_v16, %v1634_v7  ;;  %1277 = vtanh.f32 %v919_v2 }
 0x49b   :  { %v1272_v47 = vpop.eup %1271  ;;  %1279 = vtanh.f32 %v918_v53 }
 0x49c   :  { %v906_v8 = vmul.f32 %v1272_v47, %v890_v41  ;;  %v907_v48 = vmul.f32 %v1272_v47, %v891_v1  ;;  %v921_v18 = vadd.f32 %v913_v9, %v1644_v12  ;;  %v920_v19 = vadd.f32 %v912_v17, %v1641_v54 }
 0x49e   :  { %v914_v20 = vmul.f32 %v906_v8, %v1631_v39  ;;  %v915_v57 = vmul.f32 %v907_v48, %v1634_v7  ;;  %1281 = vtanh.f32 %v921_v18 }
 0x49f   :  { %1283 = vtanh.f32 %v920_v19 }
 0x4a0   :  { %v923_v21 = vadd.f32 %v915_v57, %v1644_v12  ;;  %v922_v22 = vadd.f32 %v914_v20, %v1641_v54 }
 0x4a2   :  { %1285 = vtanh.f32 %v923_v21 }
 0x4a3   :  { %1287 = vtanh.f32 %v922_v22  ;;  %v1274_v31 = vpop.eup %1273 }
 0x4a4   :  { %v1276_v63 = vpop.eup %1275 }
 0x4a7   :  { %v1278_v3 = vpop.eup %1277 }
 0x4a8   :  { %v1280_v23 = vpop.eup %1279  ;;  %v933_v24 = vpack.c.bf16 %v1278_v3, %v1274_v31 }
 0x4a9   :  { %v932_v55 = vpack.c.bf16 %v1280_v23, %v1276_v63 }
 0x4aa   :  { %968 = vmatprep.mubr.bf16.mxu1 %v933_v24 }
 0x4ab   :  { %969 = vmatmul.mubr.bf16.vlgmr.msra.gmra.mxu1 %v932_v55  ;;  %v1282_v52 = vpop.eup %1281 }
 0x4ac   :  { %v1284_v39 = vpop.eup %1283 }
 0x4af   :  { %v1286_v26 = vpop.eup %1285 }
 0x4b0   :  { %v1288_v7 = vpop.eup %1287  ;;  %v935_v5 = vpack.c.bf16 %v1286_v26, %v1282_v52 }
 0x4b1   :  { %v934_v12 = vpack.c.bf16 %v1288_v7, %v1284_v39 }
 0x4b2   :  { %976 = vmatprep.mubr.bf16.mxu1 %v935_v5 }
 0x4b3   :  { %977 = vmatmul.mubr.bf16.gmra.mxu1 %v934_v12 }
 0x56b   :  { %v1138_v54 = vpop.f32.mrf.mxu1 }
 0x56d   :  { %v1139_v30 = vpop.f32.mrf.mxu1 }
 0x56e   :  { %v1140_v32 = vadd.f32 %v1139_v30, %v1138_v54 }
 0x56f   :  { %v1141_v28 = vpop.f32.mrf.mxu1 }
 0x570   :  { %v971_v58 = vadd.f32 %v1140_v32, %v1721_v25 }
 0x571   :  { %v1142_v27 = vpop.f32.mrf.mxu1 }
 0x572   :  { %v1143_v37 = vadd.f32 %v1142_v27, %v1141_v28 }
 0x573   :  { %v1144_v36 = vpop.f32.mrf.mxu1 }
 0x574   :  { %v974_v49 = vadd.f32 %v1143_v37, %v1721_v25 }
 0x575   :  { %v1145_v60 = vpop.f32.mrf.mxu1 }
 0x576   :  { %v1078_v40 = vpack.c.bf16 %v974_v49, %v971_v58  ;;  %v1146_v42 = vadd.f32 %v1145_v60, %v1144_v36 }
 0x577   :  { %v1147_v59 = vpop.f32.mrf.mxu1 }
 0x578   :  { %1086 = vst [vmem:[%s1820_s5 + $0x10] sm:$0xff] %v1078_v40   ;;  %v979_v45 = vadd.f32 %v1146_v42, %v1721_v25 }
 0x579   :  { %v1148_v44 = vpop.f32.mrf.mxu1 }
 0x57a   :  { %v1149_v38 = vadd.f32 %v1148_v44, %v1147_v59 }
 0x57c   :  { %v982_v56 = vadd.f32 %v1149_v38, %v1721_v25 }
 0x57e   :  { %v1083_v11 = vpack.c.bf16 %v982_v56, %v979_v45 }
 0x580   :  { %1087 = vst [vmem:[%s1820_s5 + $0x18] sm:$0xff] %v1083_v11  }

</bundles_post_ra>
